<compile_context>
chip_gen: v7x
topology: tpu7x:2x2x1
jax: 0.10.0
libtpu: 0.0.40
codegen_flags: <defaults>
</compile_context>

<pallas_src>
import functools

import jax
import jax.numpy as jnp
from jax.experimental import pallas as pl
from jax.experimental.pallas import tpu as pltpu

# PyTorch F.selu constants
_SELU_ALPHA = 1.6732632423543772
_SELU_SCALE = 1.0507009873554805

# Working-set budget used when sizing the row tile: fits v7x's 64 MiB physical
# VMEM with headroom and is comfortably inside v5e/v6e's 128 MiB.
_VMEM_WORKING_SET_BUDGET = 44 * 1024 * 1024
_VMEM_LIMIT_BYTES = 56 * 1024 * 1024


def _selu(x):
    # Clamp before exp so the dead branch of the select never produces inf.
    neg = _SELU_ALPHA * (jnp.exp(jnp.minimum(x, 0.0)) - 1.0)
    return _SELU_SCALE * jnp.where(x > 0, x, neg)


def _round_up(v, m):
    return ((v + m - 1) // m) * m


def _graph_capsule_kernel(num_gfc_layers, a_ref, xp_ref, xr_ref, *refs):
    """One grid step processes a TM-row tile of nodes.

    a_ref  : [TM, Np]   adjacency row tile (streamed, double-buffered)
    xp_ref : [Np, S*F]  concat([x, x^2, ..., x^S]) matmul operand (resident,
                        single-buffered, same dtype as A)
    xr_ref : [TM, S*F]  f32 row tile of the same powers (the "+ x" residual)
    refs   : [W_0, b_0, ..., W_{L-1}, b_{L-1}, out_ref]
             W_j: [S*in_j, width_j] f32 block-diagonal fused weights
             b_j: [1, width_j]      f32 concatenated biases
    out_ref: [TM, OUT_PAD] f32 (OUT_PAD = S*H rounded up to 128 lanes)
    """
    out_ref = refs[-1]
    wb = refs[:-1]

    # Graph propagation for ALL output stats in one wide MXU matmul; operands
    # share a dtype so the MXU runs single-pass, accumulation stays f32.
    out = jnp.dot(a_ref[...], xp_ref[...],
                  preferred_element_type=jnp.float32) + xr_ref[...]

    # Fused (block-diagonal) per-stat MLP: one matmul per gfc layer.
    for j in range(num_gfc_layers):
        w = wb[2 * j][...]
        b = wb[2 * j + 1][...]
        out = _selu(jnp.dot(out, w, preferred_element_type=jnp.float32) + b)

    # Single lane-dense store of the whole [TM, OUT_PAD] result slab.
    out_ref[...] = out.astype(out_ref.dtype)


def _pick_row_tile(N, sf, out_pad, w_bytes, prop_elem_bytes, tile_rows):
    """Row-tile size: as large as the cross-gen VMEM budget allows."""
    n8 = _round_up(max(N, 1), 8)
    tm = max(8, min(_round_up(tile_rows, 8), n8))
    # Prefer >= 2 grid steps so the "parallel" row axis can shard across
    # v7x's two TensorCores (irrelevant on v5e/v6e: single TC).
    if n8 >= 256 and _round_up(N, tm) // tm < 2:
        tm = max(128, _round_up(n8 // 2, 8))
    # Shrink until the VMEM working set fits the budget.
    while tm > 128:
        n_pad = _round_up(N, tm)
        est = (2 * tm * n_pad * prop_elem_bytes   # double-buffered A row tile
               + n_pad * sf * prop_elem_bytes     # resident x_pow (Buffered(1))
               + 2 * tm * sf * 4                  # double-buffered residual tile
               + w_bytes                          # fused weights / biases
               + 2 * tm * out_pad * 4)            # double-buffered output tile
        if est <= _VMEM_WORKING_SET_BUDGET:
            break
        tm = max(128, _round_up(tm // 2, 8))
    return tm


def graph_capsule_conv(A, x_in, weights, biases, *, num_stats_out,
                       num_gfc_layers, hidden_dim, tile_rows=256,
                       propagation_dtype=jnp.bfloat16):
    """GraphCapsuleConv forward.

    weights[i][j]: [in_dim, hidden] (already [in, out]); biases[i][j]: [1, hidden].

    propagation_dtype: dtype of both operands of the A @ x_pow MXU matmul.
    bfloat16 (default) is exact for binary 0/1 adjacencies and halves the
    dominant O(N^2) HBM traffic; pass jnp.float32 for weighted/normalised
    adjacencies or when tighter accuracy is required.  Accumulation, the
    residual add and the gfc MLP are always f32.
    """
    assert num_gfc_layers >= 1
    N, F = x_in.shape
    S, H = num_stats_out, hidden_dim
    sf = S * F
    out_feat = S * H
    out_pad = _round_up(out_feat, 128)            # lane-dense output stores

    # Block-diagonal fusion of the S per-stat Linear stacks (off-blocks are
    # zero => numerically identical); last layer zero-padded on its output dim
    # to a 128-lane multiple so the output store is a single unmasked slab.
    fused = []
    for j in range(num_gfc_layers):
        w_j = jax.scipy.linalg.block_diag(*[weights[i][j] for i in range(S)])
        b_j = jnp.concatenate([biases[i][j] for i in range(S)], axis=1)
        if j == num_gfc_layers - 1 and out_pad != out_feat:
            w_j = jnp.pad(w_j, ((0, 0), (0, out_pad - out_feat)))
            b_j = jnp.pad(b_j, ((0, 0), (0, out_pad - out_feat)))
        fused.append(w_j.astype(jnp.float32))
        fused.append(b_j.astype(jnp.float32))
    w_bytes = sum(int(a.size) * 4 for a in fused)

    prop_elem = jnp.dtype(propagation_dtype).itemsize
    tm = _pick_row_tile(N, sf, out_pad, w_bytes, prop_elem, tile_rows)
    n_pad = _round_up(N, tm)

    # Precompute concat([x, x^2, ..., x^S]) ONCE in the wrapper (plain XLA op)
    # instead of rebuilding it inside every grid step.
    x32 = x_in.astype(jnp.float32)
    pows = [x32]
    for _ in range(S - 1):
        pows.append(pows[-1] * x32)
    x_pow = jnp.concatenate(pows, axis=1)                       # [N, S*F] f32

    if n_pad != N:
        A = jnp.pad(A, ((0, n_pad - N), (0, n_pad - N)))
        x_pow = jnp.pad(x_pow, ((0, n_pad - N), (0, 0)))

    a_prop = A.astype(propagation_dtype)       # exact for 0/1 adjacency in bf16
    xp_prop = x_pow.astype(propagation_dtype)  # matmul operand (matches A dtype)
    xr_f32 = x_pow                             # f32 residual term (row-tiled)

    args = [a_prop, xp_prop, xr_f32] + fused

    const_buf = pl.Buffered(1)   # grid-invariant inputs: no second VMEM buffer
    in_specs = [
        pl.BlockSpec((tm, n_pad), lambda i: (i, 0)),               # A row tile
        pl.BlockSpec((n_pad, sf), lambda i: (0, 0),
                     pipeline_mode=const_buf),                     # x_pow resident
        pl.BlockSpec((tm, sf), lambda i: (i, 0)),                  # residual tile
    ]
    for arr in fused:                                              # W / b constant
        in_specs.append(pl.BlockSpec(arr.shape, lambda i: (0, 0),
                                     pipeline_mode=const_buf))
    out_spec = pl.BlockSpec((tm, out_pad), lambda i: (i, 0))

    # Advisory cost hint so XLA schedules neighbours around this long,
    # memory-bound custom call.
    flops = 2 * n_pad * n_pad * sf
    for j in range(num_gfc_layers):
        w = fused[2 * j]
        flops += 2 * n_pad * int(w.shape[0]) * int(w.shape[1])
    transcendentals = n_pad * out_pad * num_gfc_layers            # exp in SELU
    bytes_accessed = (int(a_prop.size) * prop_elem
                      + int(xp_prop.size) * prop_elem
                      + int(xr_f32.size) * 4
                      + w_bytes
                      + n_pad * out_pad * 4)

    kernel = functools.partial(_graph_capsule_kernel, num_gfc_layers)

    out = pl.pallas_call(
        kernel,
        grid=(n_pad // tm,),
        in_specs=in_specs,
        out_specs=out_spec,
        out_shape=jax.ShapeDtypeStruct((n_pad, out_pad), jnp.float32),
        compiler_params=pltpu.CompilerParams(
            dimension_semantics=("parallel",),
            vmem_limit_bytes=_VMEM_LIMIT_BYTES),
        cost_estimate=pl.CostEstimate(
            flops=int(flops),
            transcendentals=int(transcendentals),
            bytes_accessed=int(bytes_accessed)),
    )(*args)

    # Drop row padding and lane padding.
    return out[:N, :out_feat]


def reference(A, x_in, weights, biases, *, num_stats_out, num_gfc_layers):
    """Pure-JAX f32 reference mirroring the PyTorch forward exactly."""
    x = x_in
    outs = []
    for i in range(num_stats_out):
        out = A @ x + x
        for j in range(num_gfc_layers):
            out = _selu(out @ weights[i][j] + biases[i][j])
        outs.append(out)
        x = x * x_in
    return jnp.concatenate(outs, axis=1)


if __name__ == "__main__":
    # Module hyper-parameters (small, consistent with __init__)
    input_dim = 16
    num_stats_in = 2
    hidden_dim = 32
    num_gfc_layers = 2
    num_stats_out = 2

    N = 256                               # number of graph nodes (2 row tiles)
    feat_dim = input_dim * num_stats_in   # = curr_input_dim of first Linear

    key = jax.random.PRNGKey(0)
    k_a, k_x, k_w = jax.random.split(key, 3)

    # Dense 0/1 adjacency (spmm(A, x) == A @ x) and node features.
    A = (jax.random.uniform(k_a, (N, N), jnp.float32) < 0.1).astype(jnp.float32)
    x = jax.random.normal(k_x, (N, feat_dim), jnp.float32) * 0.5

    # Deterministic parameter init (synthetic; shapes follow the module).
    weights, biases = [], []
    for i in range(num_stats_out):
        w_i, b_i = [], []
        curr_in = feat_dim
        for j in range(num_gfc_layers):
            k_w, kw, kb = jax.random.split(k_w, 3)
            bound = 1.0 / float(curr_in) ** 0.5
            w_i.append(jax.random.uniform(kw, (curr_in, hidden_dim),
                                          jnp.float32, -bound, bound))
            b_i.append(jax.random.uniform(kb, (1, hidden_dim),
                                          jnp.float32, -bound, bound))
            curr_in = hidden_dim
        weights.append(w_i)
        biases.append(b_i)

    ref = reference(A, x, weights, biases,
                    num_stats_out=num_stats_out,
                    num_gfc_layers=num_gfc_layers)

    # Fast path: bf16 propagation operands (A is binary -> exact; x_pow is
    # rounded to bf16, so compare at bf16-level tolerance).
    out_bf16 = graph_capsule_conv(A, x, weights, biases,
                                  num_stats_out=num_stats_out,
                                  num_gfc_layers=num_gfc_layers,
                                  hidden_dim=hidden_dim)
    out_bf16 = jax.block_until_ready(out_bf16)
    assert out_bf16.shape == (N, num_stats_out * hidden_dim), out_bf16.shape
    err_bf16 = float(jnp.max(jnp.abs(out_bf16 - ref)))
    assert jnp.allclose(out_bf16, ref, atol=5e-2, rtol=5e-2), err_bf16

    # Full-precision path (for weighted adjacencies): f32 propagation operands.
    out_f32 = graph_capsule_conv(A, x, weights, biases,
                                 num_stats_out=num_stats_out,
                                 num_gfc_layers=num_gfc_layers,
                                 hidden_dim=hidden_dim,
                                 propagation_dtype=jnp.float32)
    out_f32 = jax.block_until_ready(out_f32)
    err_f32 = float(jnp.max(jnp.abs(out_f32 - ref)))
    assert jnp.allclose(out_f32, ref, atol=5e-4, rtol=5e-4), err_f32

    print("KERNEL_OK")
</pallas_src>

<mosaic_0001>
module attributes {stable_mosaic.version = 11 : i64} {
  func.func @_graph_capsule_kernel(%arg0: i32, %arg1: memref<128x256xbf16, #tpu.memory_space<vmem>>, %arg2: memref<256x64xbf16, #tpu.memory_space<vmem>>, %arg3: memref<128x64xf32, #tpu.memory_space<vmem>>, %arg4: memref<64x64xf32, #tpu.memory_space<vmem>>, %arg5: memref<1x64xf32, #tpu.memory_space<vmem>>, %arg6: memref<64x128xf32, #tpu.memory_space<vmem>>, %arg7: memref<1x128xf32, #tpu.memory_space<vmem>>, %arg8: memref<128x128xf32, #tpu.memory_space<vmem>>) attributes {dimension_semantics = [#tpu.dimension_semantics<parallel>], iteration_bounds = array<i64: 2>, scalar_prefetch = 0 : i64, scratch_operands = 0 : i64, tpu.core_type = #tpu.core_type<tc>, window_params = [{transform_indices = @transform_0, window_bounds = array<i64: 128, 256>}, {pipeline_mode = #tpu.pipeline_mode<synchronous>, transform_indices = @transform_1, window_bounds = array<i64: 256, 64>}, {transform_indices = @transform_2, window_bounds = array<i64: 128, 64>}, {pipeline_mode = #tpu.pipeline_mode<synchronous>, transform_indices = @transform_3, window_bounds = array<i64: 64, 64>}, {pipeline_mode = #tpu.pipeline_mode<synchronous>, transform_indices = @transform_4, window_bounds = array<i64: 1, 64>}, {pipeline_mode = #tpu.pipeline_mode<synchronous>, transform_indices = @transform_5, window_bounds = array<i64: 64, 128>}, {pipeline_mode = #tpu.pipeline_mode<synchronous>, transform_indices = @transform_6, window_bounds = array<i64: 1, 128>}, {transform_indices = @transform_7, window_bounds = array<i64: 128, 128>}]} {
    %c0 = arith.constant 0 : index
    %c0_0 = arith.constant 0 : index
    %0 = vector.load %arg1[%c0, %c0_0] : memref<128x256xbf16, #tpu.memory_space<vmem>>, vector<128x256xbf16>
    %c0_1 = arith.constant 0 : index
    %c0_2 = arith.constant 0 : index
    %1 = vector.load %arg2[%c0_1, %c0_2] : memref<256x64xbf16, #tpu.memory_space<vmem>>, vector<256x64xbf16>
    %cst = arith.constant dense<0.000000e+00> : vector<128x64xf32>
    %2 = tpu.matmul %0, %1, %cst {dimension_numbers = #tpu.dot_dimension_numbers<[1], [0], [0], [1], [0, 0, 1, 1], [], []>} : vector<128x256xbf16>, vector<256x64xbf16>, vector<128x64xf32> -> vector<128x64xf32>
    %c0_3 = arith.constant 0 : index
    %c0_4 = arith.constant 0 : index
    %3 = vector.load %arg3[%c0_3, %c0_4] : memref<128x64xf32, #tpu.memory_space<vmem>>, vector<128x64xf32>
    %4 = arith.addf %2, %3 : vector<128x64xf32>
    %c0_5 = arith.constant 0 : index
    %c0_6 = arith.constant 0 : index
    %5 = vector.load %arg4[%c0_5, %c0_6] : memref<64x64xf32, #tpu.memory_space<vmem>>, vector<64x64xf32>
    %c0_7 = arith.constant 0 : index
    %c0_8 = arith.constant 0 : index
    %6 = vector.load %arg5[%c0_7, %c0_8] : memref<1x64xf32, #tpu.memory_space<vmem>>, vector<1x64xf32>
    %cst_9 = arith.constant dense<0.000000e+00> : vector<128x64xf32>
    %7 = tpu.matmul %4, %5, %cst_9 {dimension_numbers = #tpu.dot_dimension_numbers<[1], [0], [0], [1], [0, 0, 1, 1], [], []>} : vector<128x64xf32>, vector<64x64xf32>, vector<128x64xf32> -> vector<128x64xf32>
    %8 = vector.broadcast %6 : vector<1x64xf32> to vector<128x64xf32>
    %9 = arith.addf %7, %8 : vector<128x64xf32>
    %cst_10 = arith.constant 0.000000e+00 : f32
    %10 = vector.broadcast %cst_10 : f32 to vector<128x64xf32>
    %11 = arith.minimumf %9, %10 : vector<128x64xf32>
    %12 = math.exp %11 : vector<128x64xf32>
    %cst_11 = arith.constant 1.000000e+00 : f32
    %13 = vector.broadcast %cst_11 : f32 to vector<128x64xf32>
    %14 = arith.subf %12, %13 : vector<128x64xf32>
    %cst_12 = arith.constant 1.67326319 : f32
    %15 = vector.broadcast %cst_12 : f32 to vector<128x64xf32>
    %16 = arith.mulf %15, %14 : vector<128x64xf32>
    %cst_13 = arith.constant 0.000000e+00 : f32
    %17 = vector.broadcast %cst_13 : f32 to vector<128x64xf32>
    %18 = arith.cmpf ogt, %9, %17 : vector<128x64xf32>
    %19 = arith.select %18, %9, %16 : vector<128x64xi1>, vector<128x64xf32>
    %cst_14 = arith.constant 1.05070102 : f32
    %20 = vector.broadcast %cst_14 : f32 to vector<128x64xf32>
    %21 = arith.mulf %20, %19 : vector<128x64xf32>
    %c0_15 = arith.constant 0 : index
    %c0_16 = arith.constant 0 : index
    %22 = vector.load %arg6[%c0_15, %c0_16] : memref<64x128xf32, #tpu.memory_space<vmem>>, vector<64x128xf32>
    %c0_17 = arith.constant 0 : index
    %c0_18 = arith.constant 0 : index
    %23 = vector.load %arg7[%c0_17, %c0_18] : memref<1x128xf32, #tpu.memory_space<vmem>>, vector<1x128xf32>
    %cst_19 = arith.constant dense<0.000000e+00> : vector<128x128xf32>
    %24 = tpu.matmul %21, %22, %cst_19 {dimension_numbers = #tpu.dot_dimension_numbers<[1], [0], [0], [1], [0, 0, 1, 1], [], []>} : vector<128x64xf32>, vector<64x128xf32>, vector<128x128xf32> -> vector<128x128xf32>
    %25 = vector.broadcast %23 : vector<1x128xf32> to vector<128x128xf32>
    %26 = arith.addf %24, %25 : vector<128x128xf32>
    %cst_20 = arith.constant 0.000000e+00 : f32
    %27 = vector.broadcast %cst_20 : f32 to vector<128x128xf32>
    %28 = arith.minimumf %26, %27 : vector<128x128xf32>
    %29 = math.exp %28 : vector<128x128xf32>
    %cst_21 = arith.constant 1.000000e+00 : f32
    %30 = vector.broadcast %cst_21 : f32 to vector<128x128xf32>
    %31 = arith.subf %29, %30 : vector<128x128xf32>
    %cst_22 = arith.constant 1.67326319 : f32
    %32 = vector.broadcast %cst_22 : f32 to vector<128x128xf32>
    %33 = arith.mulf %32, %31 : vector<128x128xf32>
    %cst_23 = arith.constant 0.000000e+00 : f32
    %34 = vector.broadcast %cst_23 : f32 to vector<128x128xf32>
    %35 = arith.cmpf ogt, %26, %34 : vector<128x128xf32>
    %36 = arith.select %35, %26, %33 : vector<128x128xi1>, vector<128x128xf32>
    %cst_24 = arith.constant 1.05070102 : f32
    %37 = vector.broadcast %cst_24 : f32 to vector<128x128xf32>
    %38 = arith.mulf %37, %36 : vector<128x128xf32>
    %c0_25 = arith.constant 0 : index
    %c0_26 = arith.constant 0 : index
    %39 = vector.load %arg8[%c0_25, %c0_26] : memref<128x128xf32, #tpu.memory_space<vmem>>, vector<128x128xf32>
    tpu.vector_store %arg8[%c0_25, %c0_26], %38 {strides = array<i32>} : memref<128x128xf32, #tpu.memory_space<vmem>>, vector<128x128xf32>,
    return
  }
  func.func @transform_0(%arg0: i32) -> (i32, i32) {
    %c0_i32 = arith.constant 0 : i32
    %c0_i32_0 = arith.constant 0 : i32
    return %arg0, %c0_i32 : i32, i32
  }
  func.func @transform_1(%arg0: i32) -> (i32, i32) {
    %c0_i32 = arith.constant 0 : i32
    %c0_i32_0 = arith.constant 0 : i32
    %c0_i32_1 = arith.constant 0 : i32
    return %c0_i32, %c0_i32_0 : i32, i32
  }
  func.func @transform_2(%arg0: i32) -> (i32, i32) {
    %c0_i32 = arith.constant 0 : i32
    %c0_i32_0 = arith.constant 0 : i32
    return %arg0, %c0_i32 : i32, i32
  }
  func.func @transform_3(%arg0: i32) -> (i32, i32) {
    %c0_i32 = arith.constant 0 : i32
    %c0_i32_0 = arith.constant 0 : i32
    %c0_i32_1 = arith.constant 0 : i32
    return %c0_i32, %c0_i32_0 : i32, i32
  }
  func.func @transform_4(%arg0: i32) -> (i32, i32) {
    %c0_i32 = arith.constant 0 : i32
    %c0_i32_0 = arith.constant 0 : i32
    %c0_i32_1 = arith.constant 0 : i32
    return %c0_i32, %c0_i32_0 : i32, i32
  }
  func.func @transform_5(%arg0: i32) -> (i32, i32) {
    %c0_i32 = arith.constant 0 : i32
    %c0_i32_0 = arith.constant 0 : i32
    %c0_i32_1 = arith.constant 0 : i32
    return %c0_i32, %c0_i32_0 : i32, i32
  }
  func.func @transform_6(%arg0: i32) -> (i32, i32) {
    %c0_i32 = arith.constant 0 : i32
    %c0_i32_0 = arith.constant 0 : i32
    %c0_i32_1 = arith.constant 0 : i32
    return %c0_i32, %c0_i32_0 : i32, i32
  }
  func.func @transform_7(%arg0: i32) -> (i32, i32) {
    %c0_i32 = arith.constant 0 : i32
    %c0_i32_0 = arith.constant 0 : i32
    return %arg0, %c0_i32 : i32, i32
  }
}

</mosaic_0001>

<bundles_post_ra>
// kernel: tpu_custom_call.1
= control target key start
LH: loop header
LB: loop body
LE: loop exit
PB: predicated region body
PF: predicated region fallthrough
CT: control target
= control target key end

     0   :  { %12 = vsyncpa [#allocation3], 0  ;;  %s2377_s0 = inlined_call_operand.vmem [shape: bf16[256,256], index: 0, kind: input, shape index: {}]   ;;  %s2378_s1 = inlined_call_operand.vmem [shape: bf16[256,64], index: 1, kind: input, shape index: {}]   ;;  %s2379_s2 = inlined_call_operand.vmem [shape: f32[256,64], index: 2, kind: input, shape index: {}]   ;;  %s2380_s3 = inlined_call_operand.vmem [shape: f32[64,64], index: 3, kind: input, shape index: {}]   ;;  %s2381_s4 = inlined_call_operand.vmem [shape: f32[1,64], index: 4, kind: input, shape index: {}]   ;;  %s2382_s5 = inlined_call_operand.vmem [shape: f32[64,128], index: 5, kind: input, shape index: {}]   ;;  %s2383_s6 = inlined_call_operand.vmem [shape: f32[1,128], index: 6, kind: input, shape index: {}]   ;;  %s2384_s7 = inlined_call_operand.hbm [shape: f32[256,128], index: 7, kind: output, shape index: {}]  }
   0x1   :  { %14 = vsyncpa [#allocation3 + $0x1], 0  ;;  %s2011_s24 = smov 0   ;;  %s2013_s25 = smov 0  }
   0x2   :  { %s2015_s26 = smov 0   ;;  %s2017_s27 = smov 0  }
   0x3 LB: > { %s2032_s28 = sadd.s32 4294967295, %s1966_s27   ;;  %s1420_s29 = sadd.s32 4294967294, %s1966_s27   ;;  %s1966_s27 = sphi %s2017_s27, %s2390_s27   ;;  %s1962_s26 = sphi %s2015_s26, %s2389_s26   ;;  %s1958_s25 = sphi %s2013_s25, %s2388_s25   ;;  %s1954_s24 = sphi %s2011_s24, %s2387_s24  }
   0x4   : > { %s2036_s30 = sadd.s32 1, %s1966_s27   ;;  %s184_s8 = sadd.s32 1, %s1962_s26 }
   0x5   : > { %s181_s9 = ssub.s32 %s1966_s27, %s2036_s30  ;;  %p194_p0 = scmp.ne.s32.totalorder %s1962_s26, %s1958_s25 }
   0x6   : > { %p182_p1 = scmp.eq.s32.totalorder %s181_s9, 0  ;;  %p195_p2 = scmp.eq.s32.totalorder %s2032_s28, 1 }
   0x7   : > { %p200_p3 = scmp.ne.s32.totalorder %s1958_s25, %s1954_s24  ;;  %p201_p4 = scmp.eq.s32.totalorder %s1420_s29, 1 }
   0x8   : > { %s2047_s10 = scalar_select %p182_p1, %s1962_s26, %s184_s8  }
   0x9   : > { %p2049_p5 = por %p195_p2, %p194_p0  ;;  %p2053_p6 = por %p201_p4, %p200_p3 }
   0xa   : > { %p1423_p7 = scmp.ge.s32.totalorder %s1966_s27, 1  ;;  %p253_p8 = scmp.lt.s32.totalorder %s1966_s27, 3 }
   0xc   : > { %p254_p9 = pnand %p1423_p7, %p253_p8 }
   0xd   : > { %v1800_v0 = vld [vmem:[%s2378_s1 + $0x40] sm:$0xff] (!%p254_p9)   ;;  %s1425_s15 = sshll.u32 (!%p254_p9), %s2032_s28, 4  ;;  %v1802_v2 = vld [vmem:[%s2378_s1 + $0x48] sm:$0xff] (!%p254_p9)   ;;  %v1804_v4 = vld [vmem:[%s2378_s1 + $0x50] sm:$0xff] (!%p254_p9)   ;;  %vm658_vm0 = vcmask (!%p254_p9), 523264   ;;  %s288_s9 = sand.u32 (!%p254_p9), 1, %s1958_s25  }
   0xe   : > { %257 = sbr.rel (%p254_p9) target bundleno = 811 (0x32b), region = 48  ;;  %v1801_v1 = vld [vmem:[%s2378_s1] sm:$0xff] (!%p254_p9)   ;;  %1535 = vmatprep.subr.bf16.mxu0 (!%p254_p9), %v1800_v0  ;;  %v1803_v3 = vld [vmem:[%s2378_s1 + $0x8] sm:$0xff] (!%p254_p9)   ;;  %p292_p10 = scmp.lt.s32.totalorder (!%p254_p9), %s1425_s15, 31  ;;  %v1805_v5 = vld [vmem:[%s2378_s1 + $0x10] sm:$0xff] (!%p254_p9)  }
   0xf   : > { %1536 = vmatpush3.bf16.msra.mxu0 (!%p254_p9), %v1801_v1  ;;  %v1806_v6 = vld [vmem:[%s2378_s1 + $0x58] sm:$0xff] (!%p254_p9)   ;;  %v1808_v8 = vld [vmem:[%s2378_s1 + $0x60] sm:$0xff] (!%p254_p9)   ;;  %v1810_v10 = vld [vmem:[%s2378_s1 + $0x68] sm:$0xff] (!%p254_p9)   ;;  %s1424_s13 = sshll.u32 (!%p254_p9), %s288_s9, 7  ;;  %s1534_s16 = sshll.u32 (!%p254_p9), %s2032_s28, 11 }
  0x10   : > { %1537 = vmatprep.subr.bf16.mxu0 (!%p254_p9), %v1802_v2  ;;  %v1807_v7 = vld [vmem:[%s2378_s1 + $0x18] sm:$0xff] (!%p254_p9)   ;;  %v1809_v9 = vld [vmem:[%s2378_s1 + $0x20] sm:$0xff] (!%p254_p9)   ;;  %v1811_v12 = vld [vmem:[%s2378_s1 + $0x28] sm:$0xff] (!%p254_p9)   ;;  %s2293_s14 = scalar_lea.vmem (!%p254_p9), [#allocation2], %s1424_s13  ;;  %s2336_s28 = scalar_lea.sflag (!%p254_p9), [#allocation3], %s288_s9 }
  0x11   : > { %v1812_v13 = vld [vmem:[%s2378_s1 + $0x70] sm:$0xff] (!%p254_p9)   ;;  %v1814_v15 = vld [vmem:[%s2378_s1 + $0x78] sm:$0xff] (!%p254_p9)   ;;  %v643_v17 = vld [vmem:[%s2380_s3] sm:$0xff] (!%p254_p9)  ;;  %s1346_s18 = sshll.u32 (!%p254_p9), %s2293_s14, 4  ;;  %s2330_s18 = int_to_ptr.vmem [resolvable:$true] %s1346_s18 }
  0x12   : > { %v1813_v14 = vld [vmem:[%s2378_s1 + $0x30] sm:$0xff] (!%p254_p9)   ;;  %v1815_v16 = vld [vmem:[%s2378_s1 + $0x38] sm:$0xff] (!%p254_p9)   ;;  %v644_v18 = vld [vmem:[%s2380_s3 + $0x8] sm:$0xff] (!%p254_p9) }
  0x13   : > { %1538 = vmatpush3.bf16.msra.mxu0 (!%p254_p9), %v1803_v3  ;;  %v645_v19 = vld [vmem:[%s2380_s3 + $0x10] sm:$0xff] (!%p254_p9)  ;;  %v646_v20 = vld [vmem:[%s2380_s3 + $0x18] sm:$0xff] (!%p254_p9)  ;;  %v1727_v21 = vpack.c.bf16 (!%p254_p9), %v644_v18, %v643_v17  ;;  %v647_v38 = vld [vmem:[%s2380_s3 + $0x20] sm:$0xff] (!%p254_p9) }
  0x14   : > { %1539 = vmatprep.subr.bf16.mxu0 (!%p254_p9), %v1804_v4  ;;  %v1731_v22 = vpack.c.bf16 (!%p254_p9), %v646_v20, %v645_v19  ;;  %v648_v39 = vld [vmem:[%s2380_s3 + $0x28] sm:$0xff] (!%p254_p9)  ;;  %v649_v41 = vld [vmem:[%s2380_s3 + $0x30] sm:$0xff] (!%p254_p9)  ;;  %v650_v42 = vld [vmem:[%s2380_s3 + $0x38] sm:$0xff] (!%p254_p9) }
  0x15   : > { %s2392_s15 = smov (!%p292_p10, %s1425_s15), 31  ;;  %1728 = vmatprep.subr.bf16.mxu1 %v1727_v21  ;;  %v1735_v40 = vpack.c.bf16 %v648_v39, %v647_v38  ;;  %v1739_v43 = vpack.c.bf16 %v650_v42, %v649_v41 }
  0x16   : > { %s1533_s17 = sshll.u32 %s2392_s15, 3  ;;  %1730 = vmatpush3.bf16.msra.mxu1 %v1727_v21  ;;  %s1904_s15 = scalar_lea.vmem %s2330_s18, 2048 }
  0x17   : > { %1540 = vmatpush3.bf16.msra.mxu0 %v1805_v5  ;;  %s2095_s22 = scalar_lea.vmem %s2377_s0, %s1533_s17  ;;  %1732 = vmatprep.subr.bf16.mxu1 %v1731_v22  ;;  %s2163_s20 = scalar_lea.vmem %s2379_s2, %s1533_s17 }
  0x18   : > { %1541 = vmatprep.subr.bf16.mxu0 %v1806_v6  ;;  %v1818_v11 = vld [vmem:[%s2095_s22 + $0x4] ss:$8 sps:$4 sm:$0xff]   ;;  %v1816_v23 = vld [vmem:[%s2095_s22] ss:$8 sps:$4 sm:$0xff]   ;;  %v1819_v24 = vld [vmem:[%s2095_s22 + $0x14] ss:$8 sps:$4 sm:$0xff]   ;;  %p1905_p11 = scmp.ne.s32.totalorder %s2330_s18, %s1904_s15 }
  0x19   : > { %578 = vmatprep.mubr.bf16.mxu0 %v1818_v11  ;;  %v1821_v25 = vld [vmem:[%s2095_s22 + $0x10] ss:$8 sps:$4 sm:$0xff]   ;;  %v1822_v26 = vld [vmem:[%s2095_s22 + $0x24] ss:$8 sps:$4 sm:$0xff]   ;;  %v1824_v27 = vld [vmem:[%s2095_s22 + $0x20] ss:$8 sps:$4 sm:$0xff]  }
  0x1a   : > { %1734 = vmatpush3.bf16.msra.mxu1 %v1731_v22  ;;  %v1825_v28 = vld [vmem:[%s2095_s22 + $0x34] ss:$8 sps:$4 sm:$0xff]   ;;  %v1827_v29 = vld [vmem:[%s2095_s22 + $0x30] ss:$8 sps:$4 sm:$0xff]   ;;  %v1828_v30 = vld [vmem:[%s2095_s22 + $0x44] ss:$8 sps:$4 sm:$0xff]   ;;  %p1906_p12 = pnand %p1905_p11, %p2049_p5 }
  0x1b   : > { %1542 = vmatpush3.bf16.msra.mxu0 %v1807_v7  ;;  %v1830_v31 = vld [vmem:[%s2095_s22 + $0x40] ss:$8 sps:$4 sm:$0xff]   ;;  %v1831_v32 = vld [vmem:[%s2095_s22 + $0x54] ss:$8 sps:$4 sm:$0xff]   ;;  %v1833_v33 = vld [vmem:[%s2095_s22 + $0x50] ss:$8 sps:$4 sm:$0xff]   ;;  %1736 = vmatprep.subr.bf16.mxu1 %v1735_v40 }
  0x1c   : > { %1543 = vmatprep.subr.bf16.mxu0 %v1808_v8  ;;  %v1834_v34 = vld [vmem:[%s2095_s22 + $0x64] ss:$8 sps:$4 sm:$0xff]   ;;  %v1836_v35 = vld [vmem:[%s2095_s22 + $0x60] ss:$8 sps:$4 sm:$0xff]   ;;  %v1837_v36 = vld [vmem:[%s2095_s22 + $0x74] ss:$8 sps:$4 sm:$0xff]   ;;  %p1907_p13 = pneg %p1906_p12 }
  0x1d   : > { %v1839_v37 = vld [vmem:[%s2095_s22 + $0x70] ss:$8 sps:$4 sm:$0xff]   ;;  %v354_v46 = vld [vmem:[%s2163_s20] sm:$0xff]  ;;  %v355_v49 = vld [vmem:[%s2163_s20 + $0x8] sm:$0xff]  ;;  %s1968_s17 = smov [#allocation2]  }
  0x1e   : > { %1738 = vmatpush3.bf16.msra.mxu1 %v1735_v40  ;;  %v356_v55 = vld [vmem:[%s2163_s20 + $0x10] sm:$0xff]  ;;  %v357_v59 = vld [vmem:[%s2163_s20 + $0x18] sm:$0xff]  ;;  %v358_v1 = vld [vmem:[%s2163_s20 + $0x20] sm:$0xff]  ;;  %s1908_s21 = sshll.u32 %s1968_s17, 4  ;;  %s1909_s21 = int_to_ptr.vmem [resolvable:$false] %s1908_s21 }
  0x1f   : > { %1544 = vmatpush3.bf16.msra.mxu0 %v1809_v9  ;;  %1740 = vmatprep.subr.bf16.mxu1 %v1739_v43  ;;  %v359_v5 = vld [vmem:[%s2163_s20 + $0x28] sm:$0xff]  ;;  %v360_v11 = vld [vmem:[%s2163_s20 + $0x30] sm:$0xff]  ;;  %v362_v21 = vld [vmem:[%s2163_s20 + $0x40] sm:$0xff]  ;;  %s1910_s23 = scalar_lea.vmem %s1909_s21, 4096  ;;  %p1911_p0 = scmp.lt.s32.totalorder %s2330_s18, %s1909_s21 }
  0x20   : > { %1545 = vmatprep.subr.bf16.mxu0 %v1810_v10  ;;  %v366_v41 = vld [vmem:[%s2163_s20 + $0x60] sm:$0xff]  ;;  %p1912_p1 = scmp.lt.s32.totalorder %s1910_s23, %s1904_s15 }
  0x22   : > { %1742 = vmatpush3.bf16.msra.mxu1 %v1739_v43  ;;  %p1913_p2 = por %p1912_p1, %p1911_p0 }
  0x23   : > { %1546 = vmatpush3.bf16.msra.mxu0 %v1811_v12 }
  0x24   : > { %1547 = vmatprep.subr.bf16.mxu0 %v1812_v13  ;;  %p1914_p3 = pnand %p1913_p2, %p1907_p13 }
  0x27   : > { %1548 = vmatpush3.bf16.msra.mxu0 %v1813_v14 }
  0x28   : > { %1549 = vmatprep.subr.bf16.mxu0 %v1814_v15  ;;  %v361_v15 = vld [vmem:[%s2163_s20 + $0x38] sm:$0xff] }
  0x2b   : > { %1550 = vmatpush3.bf16.msra.mxu0 %v1815_v16 }
  0x2e   : > { %579 = vmatmul.mubr.bf16.vlgmr.msra.gmra.mrb[0].mxu0 %v1816_v23 }
  0x2f   : > { %586 = vmatprep.mubr.bf16.mxu0 %v1819_v24 }
  0x36   : > { %587 = vmatmul.mubr.bf16.gmra.mrb[4].mxu0 %v1821_v25  ;;  %v363_v25 = vld [vmem:[%s2163_s20 + $0x48] sm:$0xff] }
  0x37   : > { %594 = vmatprep.mubr.bf16.mxu0 %v1822_v26 }
  0x3e   : > { %595 = vmatmul.mubr.bf16.gmra.mrb[8].mxu0 %v1824_v27 }
  0x3f   : > { %602 = vmatprep.mubr.bf16.mxu0 %v1825_v28 }
  0x46   : > { %603 = vmatmul.mubr.bf16.gmra.mrb[12].mxu0 %v1827_v29 }
  0x47   : > { %610 = vmatprep.mubr.bf16.mxu0 %v1828_v30 }
  0x4e   : > { %611 = vmatmul.mubr.bf16.gmra.mrb[16].mxu0 %v1830_v31  ;;  %v364_v31 = vld [vmem:[%s2163_s20 + $0x50] sm:$0xff] }
  0x4f   : > { %618 = vmatprep.mubr.bf16.mxu0 %v1831_v32 }
  0x56   : > { %619 = vmatmul.mubr.bf16.gmra.mrb[20].mxu0 %v1833_v33 }
  0x57   : > { %626 = vmatprep.mubr.bf16.mxu0 %v1834_v34 }
  0x5e   : > { %627 = vmatmul.mubr.bf16.gmra.mrb[24].mxu0 %v1836_v35  ;;  %v365_v35 = vld [vmem:[%s2163_s20 + $0x58] sm:$0xff] }
  0x5f   : > { %634 = vmatprep.mubr.bf16.mxu0 %v1837_v36 }
  0x66   : > { %635 = vmatmul.mubr.bf16.gmra.mrb[28].mxu0 %v1839_v37 }
 0x101   : > { %v1551_v44 = vpop.f32.mrb[0].mxu0 }
 0x102   : > { %v1552_v45 = vpop.f32.mrb[1].mxu0 }
 0x103   : > { %v1553_v47 = vadd.f32 %v1552_v45, %v1551_v44  ;;  %v1554_v48 = vpop.f32.mrb[2].mxu0  ;;  %v367_v45 = vld [vmem:[%s2163_s20 + $0x68] sm:$0xff] }
 0x104   : > { %v1555_v50 = vpop.f32.mrb[3].mxu0 }
 0x105   : > { %v1556_v51 = vadd.f32 %v1555_v50, %v1554_v48  ;;  %v581_v52 = vadd.f32 %v1553_v47, %v354_v46 }
 0x107   : > { %v584_v53 = vadd.f32 %v1556_v51, %v355_v49  ;;  %1663 = vmatprep.mubr.msk.f32.mxu1 %vm658_vm0, %v581_v52  ;;  %v368_v51 = vld [vmem:[%s2163_s20 + $0x70] sm:$0xff] }
 0x109   : > { %v1557_v54 = vpop.f32.mrb[4].mxu0  ;;  %1664 = vmatmul.mubr.msk.f32.vlgmr.msra.gmra.mrb[0].mxu1 %vm658_vm0, %v584_v53 }
 0x10a   : > { %v1558_v56 = vpop.f32.mrb[5].mxu0 }
 0x10b   : > { %v1559_v57 = vadd.f32 %v1558_v56, %v1557_v54  ;;  %v1560_v58 = vpop.f32.mrb[6].mxu0 }
 0x10c   : > { %v1561_v60 = vpop.f32.mrb[7].mxu0 }
 0x10d   : > { %v589_v61 = vadd.f32 %v1559_v57, %v356_v55  ;;  %v1562_v62 = vadd.f32 %v1561_v60, %v1560_v58  ;;  %v369_v55 = vld [vmem:[%s2163_s20 + $0x78] sm:$0xff]  ;;  %v980_v60 = vld [vmem:[%s2382_s5] sm:$0xff]  ;;  %s2328_s20 = scalar_lea.hbm %s2384_s7, %s1534_s16 }
 0x10f   : > { %v592_v63 = vadd.f32 %v1562_v62, %v357_v59  ;;  %1666 = vmatprep.mubr.msk.f32.mxu1 %vm658_vm0, %v589_v61  ;;  %v981_v61 = vld [vmem:[%s2382_s5 + $0x8] sm:$0xff] }
 0x110   : > { %v1743_v62 = vpack.c.bf16 %v981_v61, %v980_v60 }
 0x111   : > { %v1563_v0 = vpop.f32.mrb[8].mxu0  ;;  %1667 = vmatmul.mubr.msk.f32.gmra.mrb[2].mxu1 %vm658_vm0, %v592_v63  ;;  %v982_v63 = vld [vmem:[%s2382_s5 + $0x10] sm:$0xff] }
 0x112   : > { %v1564_v2 = vpop.f32.mrb[9].mxu0  ;;  %1744 = vmatprep.subr.bf16.mxu1 %v1743_v62 }
 0x113   : > { %v1565_v3 = vadd.f32 %v1564_v2, %v1563_v0  ;;  %v1566_v4 = vpop.f32.mrb[10].mxu0  ;;  %1746 = vmatpush3.bf16.msra.mxu1 %v1743_v62  ;;  %v983_v0 = vld [vmem:[%s2382_s5 + $0x18] sm:$0xff]  ;;  %v984_v2 = vld [vmem:[%s2382_s5 + $0x20] sm:$0xff] }
 0x114   : > { %v1567_v6 = vpop.f32.mrb[11].mxu0 }
 0x115   : > { %v597_v7 = vadd.f32 %v1565_v3, %v358_v1  ;;  %v1568_v8 = vadd.f32 %v1567_v6, %v1566_v4  ;;  %v1747_v1 = vpack.c.bf16 %v983_v0, %v982_v63  ;;  %v985_v3 = vld [vmem:[%s2382_s5 + $0x28] sm:$0xff]  ;;  %v987_v6 = vld [vmem:[%s2382_s5 + $0x38] sm:$0xff] }
 0x116   : > { %v1751_v4 = vpack.c.bf16 %v985_v3, %v984_v2 }
 0x117   : > { %v600_v9 = vadd.f32 %v1568_v8, %v359_v5  ;;  %1669 = vmatprep.mubr.msk.f32.mxu1 %vm658_vm0, %v597_v7  ;;  %1748 = vmatprep.subr.bf16.mxu1 %v1747_v1  ;;  %v986_v5 = vld [vmem:[%s2382_s5 + $0x30] sm:$0xff]  ;;  %v2224_v8 = vld [vmem:[%s2381_s4] ss:$0 sm:$0xff] }
 0x118   : > { %1750 = vmatpush3.bf16.msra.mxu1 %v1747_v1  ;;  %v1755_v7 = vpack.c.bf16 %v987_v6, %v986_v5 }
 0x119   : > { %v1569_v10 = vpop.f32.mrb[12].mxu0  ;;  %1670 = vmatmul.mubr.msk.f32.gmra.mrb[4].mxu1 %vm658_vm0, %v600_v9  ;;  %1752 = vmatprep.subr.bf16.mxu1 %v1751_v4 }
 0x11a   : > { %v1570_v12 = vpop.f32.mrb[13].mxu0 }
 0x11b   : > { %v1571_v13 = vadd.f32 %v1570_v12, %v1569_v10  ;;  %v1572_v14 = vpop.f32.mrb[14].mxu0 }
 0x11c   : > { %v1573_v16 = vpop.f32.mrb[15].mxu0  ;;  %1754 = vmatpush3.bf16.msra.mxu1 %v1751_v4 }
 0x11d   : > { %v605_v17 = vadd.f32 %v1571_v13, %v360_v11  ;;  %v1574_v18 = vadd.f32 %v1573_v16, %v1572_v14  ;;  %1756 = vmatprep.subr.bf16.mxu1 %v1755_v7 }
 0x11f   : > { %v608_v19 = vadd.f32 %v1574_v18, %v361_v15  ;;  %1672 = vmatprep.mubr.msk.f32.mxu1 %vm658_vm0, %v605_v17 }
 0x120   : > { %1758 = vmatpush3.bf16.msra.mxu1 %v1755_v7 }
 0x121   : > { %v1575_v20 = vpop.f32.mrb[16].mxu0  ;;  %1673 = vmatmul.mubr.msk.f32.gmra.mrb[6].mxu1 %vm658_vm0, %v608_v19 }
 0x122   : > { %v1576_v22 = vpop.f32.mrb[17].mxu0 }
 0x123   : > { %v1577_v23 = vadd.f32 %v1576_v22, %v1575_v20  ;;  %v1578_v24 = vpop.f32.mrb[18].mxu0 }
 0x124   : > { %v1579_v26 = vpop.f32.mrb[19].mxu0 }
 0x125   : > { %v613_v27 = vadd.f32 %v1577_v23, %v362_v21  ;;  %v1580_v28 = vadd.f32 %v1579_v26, %v1578_v24 }
 0x127   : > { %v616_v29 = vadd.f32 %v1580_v28, %v363_v25  ;;  %1675 = vmatprep.mubr.msk.f32.mxu1 %vm658_vm0, %v613_v27 }
 0x129   : > { %v1581_v30 = vpop.f32.mrb[20].mxu0  ;;  %1676 = vmatmul.mubr.msk.f32.gmra.mrb[8].mxu1 %vm658_vm0, %v616_v29 }
 0x12a   : > { %v1582_v32 = vpop.f32.mrb[21].mxu0 }
 0x12b   : > { %v1583_v33 = vadd.f32 %v1582_v32, %v1581_v30  ;;  %v1584_v34 = vpop.f32.mrb[22].mxu0 }
 0x12c   : > { %v1585_v36 = vpop.f32.mrb[23].mxu0 }
 0x12d   : > { %v621_v37 = vadd.f32 %v1583_v33, %v364_v31  ;;  %v1586_v38 = vadd.f32 %v1585_v36, %v1584_v34 }
 0x12f   : > { %v624_v39 = vadd.f32 %v1586_v38, %v365_v35  ;;  %1678 = vmatprep.mubr.msk.f32.mxu1 %vm658_vm0, %v621_v37 }
 0x131   : > { %v1587_v40 = vpop.f32.mrb[24].mxu0  ;;  %1679 = vmatmul.mubr.msk.f32.gmra.mrb[10].mxu1 %vm658_vm0, %v624_v39 }
 0x132   : > { %v1588_v42 = vpop.f32.mrb[25].mxu0 }
 0x133   : > { %v1589_v43 = vadd.f32 %v1588_v42, %v1587_v40  ;;  %v1590_v44 = vpop.f32.mrb[26].mxu0 }
 0x134   : > { %v1591_v46 = vpop.f32.mrb[27].mxu0 }
 0x135   : > { %v629_v47 = vadd.f32 %v1589_v43, %v366_v41  ;;  %v1592_v48 = vadd.f32 %v1591_v46, %v1590_v44 }
 0x137   : > { %v632_v49 = vadd.f32 %v1592_v48, %v367_v45  ;;  %1681 = vmatprep.mubr.msk.f32.mxu1 %vm658_vm0, %v629_v47 }
 0x139   : > { %v1593_v50 = vpop.f32.mrb[28].mxu0  ;;  %1682 = vmatmul.mubr.msk.f32.gmra.mrb[12].mxu1 %vm658_vm0, %v632_v49 }
 0x13a   : > { %v1594_v52 = vpop.f32.mrb[29].mxu0 }
 0x13b   : > { %v1595_v53 = vadd.f32 %v1594_v52, %v1593_v50  ;;  %v1596_v54 = vpop.f32.mrb[30].mxu0 }
 0x13c   : > { %v1597_v56 = vpop.f32.mrb[31].mxu0 }
 0x13d   : > { %v637_v57 = vadd.f32 %v1595_v53, %v368_v51  ;;  %v1598_v58 = vadd.f32 %v1597_v56, %v1596_v54 }
 0x13f   : > { %v640_v59 = vadd.f32 %v1598_v58, %v369_v55  ;;  %1684 = vmatprep.mubr.msk.f32.mxu1 %vm658_vm0, %v637_v57 }
 0x141   : > { %1685 = vmatmul.mubr.msk.f32.gmra.mrb[14].mxu1 %vm658_vm0, %v640_v59 }
 0x1dc   : > { %v1665_v9 = vpop.f32.mrb[0].mxu1 }
 0x1dd   : > { %v779_v10 = vadd.f32 %v1665_v9, %v2224_v8  ;;  %v773_v11 = vpop.f32.mrb[1].mxu1 }
 0x1de   : > { %v774_v12 = vadd.f32 %v2224_v8, %v773_v11 }
 0x1df   : > { %v853_v13 = vmin.f32 %v779_v10, 0.0  ;;  %vm933_vm1 = vcmp.gt.f32.partialorder %v779_v10, 0.0 }
 0x1e0   : > { %v852_v14 = vmin.f32 %v774_v12, 0.0  ;;  %vm932_vm2 = vcmp.gt.f32.partialorder %v774_v12, 0.0 }
 0x1e1   : > { %v870_v15 = vmul.f32 1.442695, %v853_v13 }
 0x1e2   : > { %v868_v16 = vmul.f32 1.442695, %v852_v14 }
 0x1e3   : > { %1840 = vpow2.f32 %v870_v15 }
 0x1e4   : > { %1842 = vpow2.f32 %v868_v16  ;;  %v1668_v17 = vpop.f32.mrb[2].mxu1 }
 0x1e5   : > { %v789_v18 = vadd.f32 %v1668_v17, %v2224_v8  ;;  %v783_v19 = vpop.f32.mrb[3].mxu1 }
 0x1e6   : > { %v784_v20 = vadd.f32 %v2224_v8, %v783_v19 }
 0x1e7   : > { %v855_v21 = vmin.f32 %v789_v18, 0.0  ;;  %vm935_vm3 = vcmp.gt.f32.partialorder %v789_v18, 0.0 }
 0x1e8   : > { %v854_v22 = vmin.f32 %v784_v20, 0.0  ;;  %vm934_vm4 = vcmp.gt.f32.partialorder %v784_v20, 0.0 }
 0x1e9   : > { %v874_v23 = vmul.f32 1.442695, %v855_v21 }
 0x1ea   : > { %v872_v24 = vmul.f32 1.442695, %v854_v22 }
 0x1eb   : > { %1844 = vpow2.f32 %v874_v23 }
 0x1ec   : > { %1846 = vpow2.f32 %v872_v24  ;;  %v1671_v25 = vpop.f32.mrb[4].mxu1 }
 0x1ed   : > { %v1841_v26 = vpop.eup %1840  ;;  %v799_v27 = vadd.f32 %v1671_v25, %v2224_v8  ;;  %v793_v28 = vpop.f32.mrb[5].mxu1 }
 0x1ee   : > { %v1843_v29 = vpop.eup %1842  ;;  %v1480_v30 = vadd.f32 -1.0, %v1841_v26  ;;  %v794_v31 = vadd.f32 %v2224_v8, %v793_v28 }
 0x1ef   : > { %v1479_v32 = vadd.f32 -1.0, %v1843_v29  ;;  %v857_v33 = vmin.f32 %v799_v27, 0.0  ;;  %vm937_vm5 = vcmp.gt.f32.partialorder %v799_v27, 0.0 }
 0x1f0   : > { %v917_v34 = vmul.f32 1.6732632, %v1480_v30  ;;  %v856_v35 = vmin.f32 %v794_v31, 0.0  ;;  %vm936_vm6 = vcmp.gt.f32.partialorder %v794_v31, 0.0 }
 0x1f1   : > { %v916_v36 = vmul.f32 1.6732632, %v1479_v32  ;;  %v878_v37 = vmul.f32 1.442695, %v857_v33 }
 0x1f2   : > { %v949_v38 = vsel %vm933_vm1, %v779_v10, %v917_v34  ;;  %v876_v39 = vmul.f32 1.442695, %v856_v35 }
 0x1f3   : > { %v948_v40 = vsel %vm932_vm2, %v774_v12, %v916_v36  ;;  %1848 = vpow2.f32 %v878_v37  ;;  %v965_v44 = vmul.f32 1.050701, %v949_v38 }
 0x1f4   : > { %v964_v41 = vmul.f32 1.050701, %v948_v40  ;;  %1850 = vpow2.f32 %v876_v39  ;;  %v1674_v42 = vpop.f32.mrb[6].mxu1 }
 0x1f5   : > { %v1845_v43 = vpop.eup %1844  ;;  %v2233_v45 = vadd.f32 %v1674_v42, %v2224_v8  ;;  %v803_v46 = vpop.f32.mrb[7].mxu1 }
 0x1f6   : > { %v1847_v47 = vpop.eup %1846  ;;  %v1482_v48 = vadd.f32 -1.0, %v1845_v43  ;;  %v804_v49 = vadd.f32 %v2224_v8, %v803_v46  ;;  %1703 = vmatprep.mubr.msk.f32.mxu1 %vm658_vm0, %v964_v41 }
 0x1f7   : > { %v1481_v50 = vadd.f32 -1.0, %v1847_v47  ;;  %v859_v51 = vmin.f32 %v2233_v45, 0.0  ;;  %1704 = vmatmul.mubr.msk.f32.vlgmr.msra.gmra.mrb[16].mxu1 %vm658_vm0, %v965_v44  ;;  %vm939_vm7 = vcmp.gt.f32.partialorder %v2233_v45, 0.0 }
 0x1f8   : > { %v919_v52 = vmul.f32 1.6732632, %v1482_v48  ;;  %v858_v53 = vmin.f32 %v804_v49, 0.0  ;;  %vm938_vm8 = vcmp.gt.f32.partialorder %v804_v49, 0.0 }
 0x1f9   : > { %v918_v54 = vmul.f32 1.6732632, %v1481_v50  ;;  %v882_v55 = vmul.f32 1.442695, %v859_v51 }
 0x1fa   : > { %v951_v56 = vsel %vm935_vm3, %v789_v18, %v919_v52  ;;  %v880_v57 = vmul.f32 1.442695, %v858_v53 }
 0x1fb   : > { %v950_v58 = vsel %vm934_vm4, %v784_v20, %v918_v54  ;;  %1852 = vpow2.f32 %v882_v55  ;;  %v967_v62 = vmul.f32 1.050701, %v951_v56 }
 0x1fc   : > { %v966_v59 = vmul.f32 1.050701, %v950_v58  ;;  %1854 = vpow2.f32 %v880_v57  ;;  %v1677_v60 = vpop.f32.mrb[8].mxu1 }
 0x1fd   : > { %v1849_v61 = vpop.eup %1848  ;;  %v2240_v63 = vadd.f32 %v1677_v60, %v2224_v8  ;;  %v813_v0 = vpop.f32.mrb[9].mxu1 }
 0x1fe   : > { %v1851_v1 = vpop.eup %1850  ;;  %v1484_v2 = vadd.f32 -1.0, %v1849_v61  ;;  %v814_v3 = vadd.f32 %v2224_v8, %v813_v0  ;;  %1706 = vmatprep.mubr.msk.f32.mxu1 %vm658_vm0, %v966_v59 }
 0x1ff   : > { %v1483_v4 = vadd.f32 -1.0, %v1851_v1  ;;  %v861_v5 = vmin.f32 %v2240_v63, 0.0  ;;  %1707 = vmatmul.mubr.msk.f32.gmra.mrb[18].mxu1 %vm658_vm0, %v967_v62  ;;  %vm941_vm9 = vcmp.gt.f32.partialorder %v2240_v63, 0.0 }
 0x200   : > { %v921_v6 = vmul.f32 1.6732632, %v1484_v2  ;;  %v860_v7 = vmin.f32 %v814_v3, 0.0  ;;  %vm940_vm10 = vcmp.gt.f32.partialorder %v814_v3, 0.0 }
 0x201   : > { %v920_v9 = vmul.f32 1.6732632, %v1483_v4  ;;  %v886_v10 = vmul.f32 1.442695, %v861_v5 }
 0x202   : > { %v953_v11 = vsel %vm937_vm5, %v799_v27, %v921_v6  ;;  %v884_v12 = vmul.f32 1.442695, %v860_v7 }
 0x203   : > { %v952_v13 = vsel %vm936_vm6, %v794_v31, %v920_v9  ;;  %1856 = vpow2.f32 %v886_v10  ;;  %v969_v17 = vmul.f32 1.050701, %v953_v11 }
 0x204   : > { %v968_v14 = vmul.f32 1.050701, %v952_v13  ;;  %1858 = vpow2.f32 %v884_v12  ;;  %v1680_v15 = vpop.f32.mrb[10].mxu1 }
 0x205   : > { %v1853_v16 = vpop.eup %1852  ;;  %v2247_v18 = vadd.f32 %v1680_v15, %v2224_v8  ;;  %v823_v19 = vpop.f32.mrb[11].mxu1 }
 0x206   : > { %v1855_v20 = vpop.eup %1854  ;;  %v1486_v21 = vadd.f32 -1.0, %v1853_v16  ;;  %v824_v22 = vadd.f32 %v2224_v8, %v823_v19  ;;  %1709 = vmatprep.mubr.msk.f32.mxu1 %vm658_vm0, %v968_v14 }
 0x207   : > { %v1485_v23 = vadd.f32 -1.0, %v1855_v20  ;;  %v863_v24 = vmin.f32 %v2247_v18, 0.0  ;;  %1710 = vmatmul.mubr.msk.f32.gmra.mrb[20].mxu1 %vm658_vm0, %v969_v17  ;;  %vm943_vm11 = vcmp.gt.f32.partialorder %v2247_v18, 0.0 }
 0x208   : > { %v923_v25 = vmul.f32 1.6732632, %v1486_v21  ;;  %v862_v26 = vmin.f32 %v824_v22, 0.0  ;;  %vm942_vm12 = vcmp.gt.f32.partialorder %v824_v22, 0.0 }
 0x209   : > { %v922_v27 = vmul.f32 1.6732632, %v1485_v23  ;;  %v890_v28 = vmul.f32 1.442695, %v863_v24 }
 0x20a   : > { %v955_v29 = vsel %vm939_vm7, %v2233_v45, %v923_v25  ;;  %v888_v30 = vmul.f32 1.442695, %v862_v26  ;;  %v2276_v26 = vld [vmem:[%s2383_s6] ss:$0 sm:$0xff] }
 0x20b   : > { %v954_v31 = vsel %vm938_vm8, %v804_v49, %v922_v27  ;;  %1860 = vpow2.f32 %v890_v28  ;;  %v971_v35 = vmul.f32 1.050701, %v955_v29 }
 0x20c   : > { %v970_v32 = vmul.f32 1.050701, %v954_v31  ;;  %1862 = vpow2.f32 %v888_v30  ;;  %v1683_v33 = vpop.f32.mrb[12].mxu1 }
 0x20d   : > { %v1857_v34 = vpop.eup %1856  ;;  %v839_v36 = vadd.f32 %v1683_v33, %v2224_v8  ;;  %v833_v37 = vpop.f32.mrb[13].mxu1 }
 0x20e   : > { %v1859_v38 = vpop.eup %1858  ;;  %v1488_v39 = vadd.f32 -1.0, %v1857_v34  ;;  %v834_v40 = vadd.f32 %v2224_v8, %v833_v37  ;;  %1712 = vmatprep.mubr.msk.f32.mxu1 %vm658_vm0, %v970_v32 }
 0x20f   : > { %v1487_v41 = vadd.f32 -1.0, %v1859_v38  ;;  %v865_v42 = vmin.f32 %v839_v36, 0.0  ;;  %1713 = vmatmul.mubr.msk.f32.gmra.mrb[22].mxu1 %vm658_vm0, %v971_v35  ;;  %vm945_vm13 = vcmp.gt.f32.partialorder %v839_v36, 0.0 }
 0x210   : > { %v925_v43 = vmul.f32 1.6732632, %v1488_v39  ;;  %v864_v44 = vmin.f32 %v834_v40, 0.0  ;;  %vm944_vm14 = vcmp.gt.f32.partialorder %v834_v40, 0.0 }
 0x211   : > { %v924_v45 = vmul.f32 1.6732632, %v1487_v41  ;;  %v894_v46 = vmul.f32 1.442695, %v865_v42 }
 0x212   : > { %v957_v47 = vsel %vm941_vm9, %v2240_v63, %v925_v43  ;;  %v892_v48 = vmul.f32 1.442695, %v864_v44 }
 0x213   : > { %v956_v49 = vsel %vm940_vm10, %v814_v3, %v924_v45  ;;  %1864 = vpow2.f32 %v894_v46  ;;  %v973_v53 = vmul.f32 1.050701, %v957_v47 }
 0x214   : > { %v972_v50 = vmul.f32 1.050701, %v956_v49  ;;  %1866 = vpow2.f32 %v892_v48  ;;  %v1686_v51 = vpop.f32.mrb[14].mxu1 }
 0x215   : > { %v1861_v52 = vpop.eup %1860  ;;  %v849_v54 = vadd.f32 %v1686_v51, %v2224_v8  ;;  %v843_v55 = vpop.f32.mrb[15].mxu1 }
 0x216   : > { %v1863_v56 = vpop.eup %1862  ;;  %v1490_v57 = vadd.f32 -1.0, %v1861_v52  ;;  %v844_v58 = vadd.f32 %v2224_v8, %v843_v55  ;;  %1715 = vmatprep.mubr.msk.f32.mxu1 %vm658_vm0, %v972_v50 }
 0x217   : > { %v1489_v59 = vadd.f32 -1.0, %v1863_v56  ;;  %v867_v60 = vmin.f32 %v849_v54, 0.0  ;;  %1716 = vmatmul.mubr.msk.f32.gmra.mrb[24].mxu1 %vm658_vm0, %v973_v53  ;;  %vm947_vm15 = vcmp.gt.f32.partialorder %v849_v54, 0.0 }
 0x218   : > { %v927_v61 = vmul.f32 1.6732632, %v1490_v57  ;;  %v866_v62 = vmin.f32 %v844_v58, 0.0  ;;  %vm946_vm1 = vcmp.gt.f32.partialorder %v844_v58, 0.0 }
 0x219   : > { %v926_v63 = vmul.f32 1.6732632, %v1489_v59  ;;  %v898_v0 = vmul.f32 1.442695, %v867_v60 }
 0x21a   : > { %v959_v1 = vsel %vm943_vm11, %v2247_v18, %v927_v61  ;;  %v896_v2 = vmul.f32 1.442695, %v866_v62 }
 0x21b   : > { %v958_v3 = vsel %vm942_vm12, %v824_v22, %v926_v63  ;;  %1868 = vpow2.f32 %v898_v0  ;;  %v975_v5 = vmul.f32 1.050701, %v959_v1 }
 0x21c   : > { %v974_v4 = vmul.f32 1.050701, %v958_v3  ;;  %1870 = vpow2.f32 %v896_v2 }
 0x21d   : > { %v1865_v8 = vpop.eup %1864 }
 0x21e   : > { %v1867_v6 = vpop.eup %1866  ;;  %v1492_v7 = vadd.f32 -1.0, %v1865_v8  ;;  %1718 = vmatprep.mubr.msk.f32.mxu1 %vm658_vm0, %v974_v4 }
 0x21f   : > { %v1491_v9 = vadd.f32 -1.0, %v1867_v6  ;;  %1719 = vmatmul.mubr.msk.f32.gmra.mrb[26].mxu1 %vm658_vm0, %v975_v5 }
 0x220   : > { %v929_v10 = vmul.f32 1.6732632, %v1492_v7 }
 0x221   : > { %v928_v11 = vmul.f32 1.6732632, %v1491_v9 }
 0x222   : > { %v961_v12 = vsel %vm945_vm13, %v839_v36, %v929_v10 }
 0x223   : > { %v960_v13 = vsel %vm944_vm14, %v834_v40, %v928_v11  ;;  %v977_v16 = vmul.f32 1.050701, %v961_v12 }
 0x224   : > { %v976_v14 = vmul.f32 1.050701, %v960_v13 }
 0x225   : > { %v1869_v15 = vpop.eup %1868 }
 0x226   : > { %v1871_v17 = vpop.eup %1870  ;;  %v1494_v18 = vadd.f32 -1.0, %v1869_v15  ;;  %1721 = vmatprep.mubr.msk.f32.mxu1 %vm658_vm0, %v976_v14 }
 0x227   : > { %v1493_v19 = vadd.f32 -1.0, %v1871_v17  ;;  %1722 = vmatmul.mubr.msk.f32.gmra.mrb[28].mxu1 %vm658_vm0, %v977_v16 }
 0x228   : > { %v931_v20 = vmul.f32 1.6732632, %v1494_v18 }
 0x229   : > { %v930_v21 = vmul.f32 1.6732632, %v1493_v19 }
 0x22a   : > { %v963_v22 = vsel %vm947_vm15, %v849_v54, %v931_v20 }
 0x22b   : > { %v962_v23 = vsel %vm946_vm1, %v844_v58, %v930_v21  ;;  %v979_v25 = vmul.f32 1.050701, %v963_v22 }
 0x22c   : > { %v978_v24 = vmul.f32 1.050701, %v962_v23 }
 0x22e   : > { %1724 = vmatprep.mubr.msk.f32.mxu1 %vm658_vm0, %v978_v24 }
 0x22f   : > { %1725 = vmatmul.mubr.msk.f32.gmra.mrb[30].mxu1 %vm658_vm0, %v979_v25 }
 0x2ca   : > { %v1705_v27 = vpop.f32.mrb[16].mxu1 }
 0x2cb   : > { %v1115_v28 = vadd.f32 %v1705_v27, %v2276_v26  ;;  %v1109_v29 = vpop.f32.mrb[17].mxu1 }
 0x2cc   : > { %v1110_v30 = vadd.f32 %v2276_v26, %v1109_v29 }
 0x2cd   : > { %v1189_v31 = vmin.f32 %v1115_v28, 0.0  ;;  %vm1269_vm0 = vcmp.gt.f32.partialorder %v1115_v28, 0.0 }
 0x2ce   : > { %v1188_v32 = vmin.f32 %v1110_v30, 0.0  ;;  %vm1268_vm2 = vcmp.gt.f32.partialorder %v1110_v30, 0.0 }
 0x2cf   : > { %v1206_v33 = vmul.f32 1.442695, %v1189_v31 }
 0x2d0   : > { %v1204_v34 = vmul.f32 1.442695, %v1188_v32 }
 0x2d1   : > { %1872 = vpow2.f32 %v1206_v33 }
 0x2d2   : > { %1874 = vpow2.f32 %v1204_v34  ;;  %v1708_v35 = vpop.f32.mrb[18].mxu1 }
 0x2d3   : > { %v1125_v36 = vadd.f32 %v1708_v35, %v2276_v26  ;;  %v1119_v37 = vpop.f32.mrb[19].mxu1 }
 0x2d4   : > { %v1120_v38 = vadd.f32 %v2276_v26, %v1119_v37 }
 0x2d5   : > { %v1191_v39 = vmin.f32 %v1125_v36, 0.0  ;;  %vm1271_vm3 = vcmp.gt.f32.partialorder %v1125_v36, 0.0 }
 0x2d6   : > { %v1190_v40 = vmin.f32 %v1120_v38, 0.0  ;;  %vm1270_vm4 = vcmp.gt.f32.partialorder %v1120_v38, 0.0 }
 0x2d7   : > { %v1210_v41 = vmul.f32 1.442695, %v1191_v39 }
 0x2d8   : > { %v1208_v42 = vmul.f32 1.442695, %v1190_v40 }
 0x2d9   : > { %1876 = vpow2.f32 %v1210_v41 }
 0x2da   : > { %1878 = vpow2.f32 %v1208_v42  ;;  %v1711_v43 = vpop.f32.mrb[20].mxu1 }
 0x2db   : > { %v1873_v44 = vpop.eup %1872  ;;  %v2284_v45 = vadd.f32 %v1711_v43, %v2276_v26  ;;  %v1129_v46 = vpop.f32.mrb[21].mxu1 }
 0x2dc   : > { %v1875_v47 = vpop.eup %1874  ;;  %v1513_v48 = vadd.f32 -1.0, %v1873_v44  ;;  %v2287_v49 = vadd.f32 %v2276_v26, %v1129_v46 }
 0x2dd   : > { %v1512_v50 = vadd.f32 -1.0, %v1875_v47  ;;  %v1193_v51 = vmin.f32 %v2284_v45, 0.0  ;;  %vm1273_vm5 = vcmp.gt.f32.partialorder %v2284_v45, 0.0 }
 0x2de   : > { %v1253_v52 = vmul.f32 1.6732632, %v1513_v48  ;;  %v1192_v53 = vmin.f32 %v2287_v49, 0.0  ;;  %vm1272_vm6 = vcmp.gt.f32.partialorder %v2287_v49, 0.0 }
 0x2df   : > { %v1252_v54 = vmul.f32 1.6732632, %v1512_v50  ;;  %v1214_v55 = vmul.f32 1.442695, %v1193_v51 }
 0x2e0   : > { %v1285_v56 = vsel %vm1269_vm0, %v1115_v28, %v1253_v52  ;;  %v1212_v57 = vmul.f32 1.442695, %v1192_v53 }
 0x2e1   : > { %v1301_v58 = vmul.f32 1.050701, %v1285_v56  ;;  %v1284_v59 = vsel %vm1268_vm2, %v1110_v30, %v1252_v54  ;;  %1880 = vpow2.f32 %v1214_v55 }
 0x2e2   : > { %v1300_v60 = vmul.f32 1.050701, %v1284_v59  ;;  %1882 = vpow2.f32 %v1212_v57  ;;  %v1714_v61 = vpop.f32.mrb[22].mxu1 }
 0x2e3   : > { %v1877_v62 = vpop.eup %1876  ;;  %1317 = vst [vmem:[%s2293_s14 + $0x8] sm:$0xff] %v1301_v58  ;;  %v1145_v63 = vadd.f32 %v1714_v61, %v2276_v26  ;;  %v1139_v0 = vpop.f32.mrb[23].mxu1 }
 0x2e4   : > { %v1879_v1 = vpop.eup %1878  ;;  %1316 = vst [vmem:[%s2293_s14] sm:$0xff] %v1300_v60  ;;  %v1515_v2 = vadd.f32 -1.0, %v1877_v62  ;;  %v1140_v3 = vadd.f32 %v2276_v26, %v1139_v0 }
 0x2e5   : > { %v1514_v4 = vadd.f32 -1.0, %v1879_v1  ;;  %v1195_v8 = vmin.f32 %v1145_v63, 0.0  ;;  %vm1275_vm7 = vcmp.gt.f32.partialorder %v1145_v63, 0.0 }
 0x2e6   : > { %v1255_v5 = vmul.f32 1.6732632, %v1515_v2  ;;  %v1194_v6 = vmin.f32 %v1140_v3, 0.0  ;;  %vm1274_vm8 = vcmp.gt.f32.partialorder %v1140_v3, 0.0 }
 0x2e7   : > { %v1254_v7 = vmul.f32 1.6732632, %v1514_v4  ;;  %v1218_v9 = vmul.f32 1.442695, %v1195_v8 }
 0x2e8   : > { %v1287_v10 = vsel %vm1271_vm3, %v1125_v36, %v1255_v5  ;;  %v1216_v11 = vmul.f32 1.442695, %v1194_v6 }
 0x2e9   : > { %v1303_v12 = vmul.f32 1.050701, %v1287_v10  ;;  %v1286_v13 = vsel %vm1270_vm4, %v1120_v38, %v1254_v7  ;;  %1884 = vpow2.f32 %v1218_v9 }
 0x2ea   : > { %v1302_v14 = vmul.f32 1.050701, %v1286_v13  ;;  %1886 = vpow2.f32 %v1216_v11  ;;  %v1717_v15 = vpop.f32.mrb[24].mxu1 }
 0x2eb   : > { %v1881_v16 = vpop.eup %1880  ;;  %1319 = vst [vmem:[%s2293_s14 + $0x18] sm:$0xff] %v1303_v12  ;;  %v1155_v17 = vadd.f32 %v1717_v15, %v2276_v26  ;;  %v1149_v18 = vpop.f32.mrb[25].mxu1 }
 0x2ec   : > { %v1883_v19 = vpop.eup %1882  ;;  %1318 = vst [vmem:[%s2293_s14 + $0x10] sm:$0xff] %v1302_v14  ;;  %v1517_v20 = vadd.f32 -1.0, %v1881_v16  ;;  %v1150_v21 = vadd.f32 %v2276_v26, %v1149_v18 }
 0x2ed   : > { %v1516_v22 = vadd.f32 -1.0, %v1883_v19  ;;  %v1197_v23 = vmin.f32 %v1155_v17, 0.0  ;;  %vm1277_vm9 = vcmp.gt.f32.partialorder %v1155_v17, 0.0 }
 0x2ee   : > { %v1257_v24 = vmul.f32 1.6732632, %v1517_v20  ;;  %v1196_v25 = vmin.f32 %v1150_v21, 0.0  ;;  %vm1276_vm10 = vcmp.gt.f32.partialorder %v1150_v21, 0.0 }
 0x2ef   : > { %v1256_v27 = vmul.f32 1.6732632, %v1516_v22  ;;  %v1222_v28 = vmul.f32 1.442695, %v1197_v23 }
 0x2f0   : > { %v1289_v29 = vsel %vm1273_vm5, %v2284_v45, %v1257_v24  ;;  %v1220_v30 = vmul.f32 1.442695, %v1196_v25 }
 0x2f1   : > { %v1305_v31 = vmul.f32 1.050701, %v1289_v29  ;;  %v1288_v32 = vsel %vm1272_vm6, %v2287_v49, %v1256_v27  ;;  %1888 = vpow2.f32 %v1222_v28 }
 0x2f2   : > { %v1304_v33 = vmul.f32 1.050701, %v1288_v32  ;;  %1890 = vpow2.f32 %v1220_v30  ;;  %v1720_v34 = vpop.f32.mrb[26].mxu1 }
 0x2f3   : > { %v1885_v35 = vpop.eup %1884  ;;  %1321 = vst [vmem:[%s2293_s14 + $0x28] sm:$0xff] %v1305_v31  ;;  %v1165_v36 = vadd.f32 %v1720_v34, %v2276_v26  ;;  %v1159_v37 = vpop.f32.mrb[27].mxu1 }
 0x2f4   : > { %v1887_v38 = vpop.eup %1886  ;;  %1320 = vst [vmem:[%s2293_s14 + $0x20] sm:$0xff] %v1304_v33  ;;  %v1519_v39 = vadd.f32 -1.0, %v1885_v35  ;;  %v1160_v40 = vadd.f32 %v2276_v26, %v1159_v37 }
 0x2f5   : > { %v1518_v41 = vadd.f32 -1.0, %v1887_v38  ;;  %v1199_v42 = vmin.f32 %v1165_v36, 0.0  ;;  %vm1279_vm11 = vcmp.gt.f32.partialorder %v1165_v36, 0.0 }
 0x2f6   : > { %v1259_v43 = vmul.f32 1.6732632, %v1519_v39  ;;  %v1198_v44 = vmin.f32 %v1160_v40, 0.0  ;;  %vm1278_vm12 = vcmp.gt.f32.partialorder %v1160_v40, 0.0 }
 0x2f7   : > { %v1258_v45 = vmul.f32 1.6732632, %v1518_v41  ;;  %v1226_v46 = vmul.f32 1.442695, %v1199_v42 }
 0x2f8   : > { %v1291_v47 = vsel %vm1275_vm7, %v1145_v63, %v1259_v43  ;;  %v1224_v48 = vmul.f32 1.442695, %v1198_v44 }
 0x2f9   : > { %v1307_v49 = vmul.f32 1.050701, %v1291_v47  ;;  %v1290_v50 = vsel %vm1274_vm8, %v1140_v3, %v1258_v45  ;;  %1892 = vpow2.f32 %v1226_v46 }
 0x2fa   : > { %v1306_v51 = vmul.f32 1.050701, %v1290_v50  ;;  %1894 = vpow2.f32 %v1224_v48  ;;  %v1723_v52 = vpop.f32.mrb[28].mxu1 }
 0x2fb   : > { %v1889_v53 = vpop.eup %1888  ;;  %1323 = vst [vmem:[%s2293_s14 + $0x38] sm:$0xff] %v1307_v49  ;;  %v1175_v54 = vadd.f32 %v1723_v52, %v2276_v26  ;;  %v1169_v55 = vpop.f32.mrb[29].mxu1 }
 0x2fc   : > { %v1891_v56 = vpop.eup %1890  ;;  %1322 = vst [vmem:[%s2293_s14 + $0x30] sm:$0xff] %v1306_v51  ;;  %v1521_v57 = vadd.f32 -1.0, %v1889_v53  ;;  %v1170_v58 = vadd.f32 %v2276_v26, %v1169_v55 }
 0x2fd   : > { %v1520_v59 = vadd.f32 -1.0, %v1891_v56  ;;  %v1201_v60 = vmin.f32 %v1175_v54, 0.0  ;;  %vm1281_vm13 = vcmp.gt.f32.partialorder %v1175_v54, 0.0 }
 0x2fe   : > { %v1261_v61 = vmul.f32 1.6732632, %v1521_v57  ;;  %v1200_v62 = vmin.f32 %v1170_v58, 0.0  ;;  %vm1280_vm14 = vcmp.gt.f32.partialorder %v1170_v58, 0.0 }
 0x2ff   : > { %v1260_v63 = vmul.f32 1.6732632, %v1520_v59  ;;  %v1230_v0 = vmul.f32 1.442695, %v1201_v60 }
 0x300   : > { %v1293_v1 = vsel %vm1277_vm9, %v1155_v17, %v1261_v61  ;;  %v1228_v2 = vmul.f32 1.442695, %v1200_v62 }
 0x301   : > { %v1309_v3 = vmul.f32 1.050701, %v1293_v1  ;;  %v1292_v4 = vsel %vm1276_vm10, %v1150_v21, %v1260_v63  ;;  %1896 = vpow2.f32 %v1230_v0 }
 0x302   : > { %v1308_v8 = vmul.f32 1.050701, %v1292_v4  ;;  %1898 = vpow2.f32 %v1228_v2  ;;  %v1726_v5 = vpop.f32.mrb[30].mxu1 }
 0x303   : > { %v1893_v6 = vpop.eup %1892  ;;  %1325 = vst [vmem:[%s2293_s14 + $0x48] sm:$0xff] %v1309_v3  ;;  %v1185_v7 = vadd.f32 %v1726_v5, %v2276_v26  ;;  %v1179_v9 = vpop.f32.mrb[31].mxu1 }
 0x304   : > { %v1895_v10 = vpop.eup %1894  ;;  %1324 = vst [vmem:[%s2293_s14 + $0x40] sm:$0xff] %v1308_v8  ;;  %v1523_v11 = vadd.f32 -1.0, %v1893_v6  ;;  %v1180_v12 = vadd.f32 %v2276_v26, %v1179_v9 }
 0x305   : > { %v1522_v13 = vadd.f32 -1.0, %v1895_v10  ;;  %v1203_v14 = vmin.f32 %v1185_v7, 0.0  ;;  %vm1283_vm15 = vcmp.gt.f32.partialorder %v1185_v7, 0.0 }
 0x306   : > { %v1263_v15 = vmul.f32 1.6732632, %v1523_v11  ;;  %v1202_v16 = vmin.f32 %v1180_v12, 0.0  ;;  %vm1282_vm1 = vcmp.gt.f32.partialorder %v1180_v12, 0.0 }
 0x307   : > { %v1262_v17 = vmul.f32 1.6732632, %v1522_v13  ;;  %v1234_v18 = vmul.f32 1.442695, %v1203_v14 }
 0x308   : > { %v1295_v19 = vsel %vm1279_vm11, %v1165_v36, %v1263_v15  ;;  %v1232_v20 = vmul.f32 1.442695, %v1202_v16 }
 0x309   : > { %v1311_v21 = vmul.f32 1.050701, %v1295_v19  ;;  %v1294_v22 = vsel %vm1278_vm12, %v1160_v40, %v1262_v17  ;;  %1900 = vpow2.f32 %v1234_v18 }
 0x30a   : > { %v1310_v23 = vmul.f32 1.050701, %v1294_v22  ;;  %1902 = vpow2.f32 %v1232_v20 }
 0x30b   : > { %v1897_v24 = vpop.eup %1896  ;;  %1327 = vst [vmem:[%s2293_s14 + $0x58] sm:$0xff] %v1311_v21 }
 0x30c   : > { %v1899_v26 = vpop.eup %1898  ;;  %1326 = vst [vmem:[%s2293_s14 + $0x50] sm:$0xff] %v1310_v23  ;;  %v1525_v25 = vadd.f32 -1.0, %v1897_v24 }
 0x30d   : > { %v1524_v27 = vadd.f32 -1.0, %v1899_v26 }
 0x30e   : > { %v1265_v28 = vmul.f32 1.6732632, %v1525_v25 }
 0x30f   : > { %v1264_v29 = vmul.f32 1.6732632, %v1524_v27 }
 0x310   : > { %v1297_v30 = vsel %vm1281_vm13, %v1175_v54, %v1265_v28 }
 0x311   : > { %v1313_v31 = vmul.f32 1.050701, %v1297_v30  ;;  %v1296_v32 = vsel %vm1280_vm14, %v1170_v58, %v1264_v29 }
 0x312   : > { %v1312_v33 = vmul.f32 1.050701, %v1296_v32 }
 0x313   : > { %v1901_v34 = vpop.eup %1900  ;;  %1329 = vst [vmem:[%s2293_s14 + $0x68] sm:$0xff] %v1313_v31 }
 0x314   : > { %v1903_v35 = vpop.eup %1902  ;;  %1328 = vst [vmem:[%s2293_s14 + $0x60] sm:$0xff] %v1312_v33  ;;  %v1527_v36 = vadd.f32 -1.0, %v1901_v34 }
 0x315   : > { %v1526_v37 = vadd.f32 -1.0, %v1903_v35 }
 0x316   : > { %v1267_v38 = vmul.f32 1.6732632, %v1527_v36 }
 0x317   : > { %v1266_v39 = vmul.f32 1.6732632, %v1526_v37 }
 0x318   : > { %v1299_v40 = vsel %vm1283_vm15, %v1185_v7, %v1267_v38 }
 0x319   : > { %v1315_v41 = vmul.f32 1.050701, %v1299_v40  ;;  %v1298_v42 = vsel %vm1282_vm1, %v1180_v12, %v1266_v39 }
 0x31a   : > { %v1314_v43 = vmul.f32 1.050701, %v1298_v42 }
 0x31b   : > { %1331 = vst [vmem:[%s2293_s14 + $0x78] sm:$0xff] %v1315_v41 }
 0x31c   : > { %1330 = vst [vmem:[%s2293_s14 + $0x70] sm:$0xff] %v1314_v43 }
 0x31d   : > { %1917 = shalt.err (!%p1914_p3)
}
 0x31e   : > { %s1918_s29 = scalar_lea.hbm %s2328_s20, 2048  ;;  %s1922_s13 = scalar_lea.hbm %s2384_s7, 4096 }
 0x31f   : > { %p1919_p4 = scmp.ne.s32.totalorder %s2328_s20, %s1918_s29  ;;  %p1923_p9 = scmp.lt.u32.totalorder %s2328_s20, %s2384_s7 }
 0x320   : > { %p1924_p10 = scmp.lt.u32.totalorder %s1922_s13, %s1918_s29  ;;  %p1926_p12 = scmp.lt.u32.totalorder %s1918_s29, %s2328_s20 }
 0x321   : > { %p1920_p7 = pnand %p1919_p4, %p2049_p5 }
 0x322   : > { %p1925_p11 = por %p1924_p10, %p1923_p9 }
 0x323   : > { %p1921_p8 = pneg %p1920_p7 }
 0x324   : > { %p1927_p13 = por %p1926_p12, %p1925_p11 }
 0x326   : > { %p1928_p0 = pnand %p1927_p13, %p1921_p8 }
 0x328   : > { %1931 = shalt.err (!%p1928_p0)
}
 0x329   : > { %s1969_s22 = smov 128   ;;  %s1970_s19 = smov 8  }
 0x32a   : > { %1759 = dma.vmem_to_hbm [thread:$0]  (%p2049_p5), %s2330_s18, 2048, %s2328_s20, %s2336_s28, %s1969_s22, %s1969_s22, %s1970_s19  }
 0x32b PF: > { %p1765_p1 = scmp.ge.s32.totalorder %s1966_s27, 2  ;;  %s1361_s15 = sand.u32 1, %s1954_s24  }
 0x32c   : > { %s1362_s17 = scalar_lea.sflag [#allocation3], %s1361_s15 }
 0x32d   : > { %p1762_p2 = pnand %p1765_p1, %p2053_p6 }
 0x32f   : > { %1949 = dma.done.wait (!%p1762_p2), %s1362_s17, 2048  }
 0x330   : > { %1951 = vsyncadd (!%p1762_p2), %s1362_s17, 4294965248  ;;  %p17_p3 = scmp.ge.s32.totalorder %s2036_s30, 4   ;;  %s2387_s24 = smov %s1958_s25 }
 0x331   : > { %s2388_s25 = smov %s1962_s26  ;;  %s2389_s26 = smov %s2047_s10 }
 0x332   : > { %s2390_s27 = smov %s2036_s30  ;;  %19 = sbr.rel (!%p17_p3) target bundleno = 3 (0x3), region = 86 }
 0x339   :  { %1367 = vsyncpa [#allocation3], 1 }
 0x33a   :  { %1369 = vsyncpa [#allocation3 + $0x1], 1 }

</bundles_post_ra>
